<compile_context>
chip_gen: v7x
topology: tpu7x:2x2x1
jax: 0.10.0
libtpu: 0.0.40
codegen_flags: <defaults>
</compile_context>

<pallas_src>
import math

import jax
import jax.numpy as jnp
from jax import lax
from jax.experimental import pallas as pl
from jax.experimental.pallas import tpu as pltpu

# Big-but-finite mask / init value: avoids inf-inf NaNs in the online softmax.
_MASK_VALUE = -1e30


def _make_kernel(*, n_real, n_pad, kv_blk, num_kv, compute_dtype):
    """Flash-style attention kernel body for one (batch, kv-block) grid step.

    Per-batch layout is (C, N): channels on sublanes, tokens on lanes.
    """
    needs_mask = n_real < n_pad
    proj_dn = (((1,), (0,)), ((), ()))    # (C,C) @ (C,M)   -> (C,M)
    score_dn = (((0,), (0,)), ((), ()))   # contract channel axis of K and Q
    pv_dn = (((1,), (0,)), ((), ()))      # (C,Tk) @ (Tk,N) -> (C,N)

    def mm(x):
        return x if x.dtype == compute_dtype else x.astype(compute_dtype)

    def kernel(qx_ref, kx_ref, vx_ref, wq_ref, wk_ref, wv_ref, bias_ref,
               o_ref, q_scr, acc_scr, m_scr, l_scr):
        kv = pl.program_id(1)

        # ---- once per batch element: project Q, reset running stats ------
        @pl.when(kv == 0)
        def _():
            # 1x1 conv == per-token linear projection: W @ x (1/sqrt(C) is
            # pre-folded into wq / bias column 0).
            q = lax.dot_general(wq_ref[...], mm(qx_ref[...]), proj_dn,
                                preferred_element_type=jnp.float32)
            q = q + bias_ref[:, 0:1]                       # (C, Nq)
            q_scr[...] = q.astype(q_scr.dtype)
            m_scr[...] = jnp.full(m_scr.shape, _MASK_VALUE, m_scr.dtype)
            l_scr[...] = jnp.zeros(l_scr.shape, l_scr.dtype)
            acc_scr[...] = jnp.zeros(acc_scr.shape, acc_scr.dtype)

        # ---- per KV block: project K/V, online-softmax update ------------
        k = lax.dot_general(wk_ref[...], mm(kx_ref[...]), proj_dn,
                            preferred_element_type=jnp.float32) + bias_ref[:, 1:2]
        v = lax.dot_general(wv_ref[...], mm(vx_ref[...]), proj_dn,
                            preferred_element_type=jnp.float32) + bias_ref[:, 2:3]
        k = k.astype(compute_dtype)                        # (C, Tk)
        v = v.astype(compute_dtype)                        # (C, Tk)

        # scores s[j, i] = sum_c k[c, j] * q[c, i]  — keys land on sublanes,
        # queries on lanes, so the softmax stats are (1, Nq) lane vectors and
        # no transpose is ever needed.
        s = lax.dot_general(k, q_scr[...], score_dn,
                            preferred_element_type=jnp.float32)   # (Tk, Nq)
        if needs_mask:
            key_idx = kv * kv_blk + lax.broadcasted_iota(jnp.int32, (kv_blk, 1), 0)
            s = jnp.where(key_idx < n_real, s, _MASK_VALUE)

        m_prev = m_scr[...]                                        # (1, Nq)
        m_new = jnp.maximum(m_prev, jnp.max(s, axis=0, keepdims=True))
        alpha = jnp.exp(m_prev - m_new)                            # (1, Nq)
        p = jnp.exp(s - m_new)                                     # (Tk, Nq)
        l_scr[...] = alpha * l_scr[...] + jnp.sum(p, axis=0, keepdims=True)
        acc_scr[...] = alpha * acc_scr[...] + lax.dot_general(
            v, p.astype(compute_dtype), pv_dn,
            preferred_element_type=jnp.float32)                    # (C, Nq)
        m_scr[...] = m_new

        # ---- last KV block: normalize, emit lane-dense (C, Nq) tile ------
        @pl.when(kv == num_kv - 1)
        def _():
            # Exact reciprocal on a (1, Nq) tile: approx buys nothing here
            # and exact keeps the f32 parity path tight.
            o_ref[...] = (acc_scr[...] *
                          pl.reciprocal(l_scr[...], approx=False)
                          ).astype(o_ref.dtype)

    return kernel


def scaled_dot_product_attention(query, key, value, params, *,
                                 matmul_dtype=jnp.bfloat16,
                                 kv_block_size=512):
    """query/key/value: (B, C, H, W) float32 (NCHW, as in PyTorch)."""
    B, C, H, W = query.shape
    N = H * W
    inv_scale = 1.0 / math.sqrt(C)
    compute_dtype = jnp.dtype(jnp.float32 if matmul_dtype is None else matmul_dtype)

    # NCHW -> (B, C, N): contiguous reshape only (no HBM transpose).
    q_cn = query.reshape(B, C, N)
    k_cn = key.reshape(B, C, N)
    v_cn = value.reshape(B, C, N)

    # Pad the token axis to a lane multiple so matmul / reduce / store tiles
    # are lane-dense; padded keys are masked before the softmax in-kernel.
    n_pad = ((N + 127) // 128) * 128
    if n_pad != N:
        pad = ((0, 0), (0, 0), (0, n_pad - N))
        q_cn = jnp.pad(q_cn, pad)
        k_cn = jnp.pad(k_cn, pad)
        v_cn = jnp.pad(v_cn, pad)

    # KV tile: a multiple of 128 that divides the padded token count.
    kv_blk = max(128, min(n_pad, (kv_block_size // 128) * 128))
    while n_pad % kv_blk:
        kv_blk -= 128
    num_kv = n_pad // kv_blk

    # Conv2d(C, C, 1) weight (C_out, C_in, 1, 1) -> (C_out, C_in); applied as
    # W @ x in the (C, N) layout.  Fold 1/sqrt(C) into the Q branch once and
    # pre-cast weights to the MXU compute dtype (halves their DMA for bf16).
    wq = (params["wq"].reshape(C, C) * inv_scale).astype(compute_dtype)
    wk = params["wk"].reshape(C, C).astype(compute_dtype)
    wv = params["wv"].reshape(C, C).astype(compute_dtype)
    # Pack the three biases into one (C, 3) f32 array: one DMA, one VMEM pad.
    bias = jnp.stack([params["bq"] * inv_scale, params["bk"], params["bv"]],
                     axis=-1).astype(jnp.float32)

    tok_q_spec = pl.BlockSpec((None, C, n_pad), lambda b, kv: (b, 0, 0))
    tok_kv_spec = pl.BlockSpec((None, C, kv_blk), lambda b, kv: (b, 0, kv))
    # Constant index_map => fetched once; Buffered(1) => no wasted double-buffer.
    w_spec = pl.BlockSpec((C, C), lambda b, kv: (0, 0),
                          pipeline_mode=pl.Buffered(1))
    b_spec = pl.BlockSpec((C, 3), lambda b, kv: (0, 0),
                          pipeline_mode=pl.Buffered(1))
    out_spec = pl.BlockSpec((None, C, n_pad), lambda b, kv: (b, 0, 0))

    # VMEM budget sized from the actual tiles (double buffers, scratch, score
    # temporaries), capped at the portable 64 MiB (v7x physical).
    f32b = 4
    cb = compute_dtype.itemsize
    vmem_est = (
        2 * C * n_pad * f32b            # query block (double-buffered)
        + 2 * 2 * C * kv_blk * f32b     # key / value blocks
        + 2 * C * n_pad * f32b          # output block
        + 3 * C * C * cb                # weights (single-buffered)
        + C * 128 * f32b                # packed bias (lane padding)
        + C * n_pad * cb                # projected-Q scratch
        + C * n_pad * f32b              # output accumulator scratch
        + 2 * 8 * n_pad * f32b          # running max / sum scratch
        + 3 * kv_blk * n_pad * f32b     # score / prob temporaries headroom
    )
    vmem_limit = int(min(max(2 * vmem_est, 32 * 2**20), 64 * 2**20))

    cost = pl.CostEstimate(
        flops=int(B * (3 * 2 * C * C * n_pad + 2 * 2 * C * n_pad * n_pad)),
        transcendentals=int(B * n_pad * n_pad),
        bytes_accessed=int(4 * B * C * n_pad * f32b + 3 * C * C * cb + C * 3 * f32b),
    )

    out_cn = pl.pallas_call(
        _make_kernel(n_real=N, n_pad=n_pad, kv_blk=kv_blk, num_kv=num_kv,
                     compute_dtype=compute_dtype),
        out_shape=jax.ShapeDtypeStruct((B, C, n_pad), query.dtype),
        grid_spec=pltpu.PrefetchScalarGridSpec(
            num_scalar_prefetch=0,
            grid=(B, num_kv),
            in_specs=[tok_q_spec, tok_kv_spec, tok_kv_spec,
                      w_spec, w_spec, w_spec, b_spec],
            out_specs=out_spec,
            scratch_shapes=[
                pltpu.VMEM((C, n_pad), compute_dtype),   # projected Q
                pltpu.VMEM((C, n_pad), jnp.float32),     # output accumulator
                pltpu.VMEM((1, n_pad), jnp.float32),     # running max
                pltpu.VMEM((1, n_pad), jnp.float32),     # running sum
            ]),
        compiler_params=pltpu.CompilerParams(
            dimension_semantics=("parallel", "arbitrary"),
            vmem_limit_bytes=vmem_limit),
        cost_estimate=cost,
    )(q_cn, k_cn, v_cn, wq, wk, wv, bias)

    if n_pad != N:
        out_cn = out_cn[:, :, :N]
    # (B, C, N) -> NCHW: contiguous reshape, free.
    return out_cn.reshape(B, C, H, W)


def init_params(key, channels):
    """Deterministic synthetic init matching Conv2d(channels, channels, 1)."""
    ks = jax.random.split(key, 6)
    bound = 1.0 / math.sqrt(channels)  # kernel_size=1 -> fan_in = channels

    def u(k, shape):
        return jax.random.uniform(k, shape, jnp.float32, -bound, bound)

    return {
        "wq": u(ks[0], (channels, channels, 1, 1)),
        "bq": u(ks[1], (channels,)),
        "wk": u(ks[2], (channels, channels, 1, 1)),
        "bk": u(ks[3], (channels,)),
        "wv": u(ks[4], (channels, channels, 1, 1)),
        "bv": u(ks[5], (channels,)),
    }


def _reference(query, key, value, params):
    """Pure-JAX reference mirroring the PyTorch forward."""
    B, C, H, W = query.shape
    scale = math.sqrt(C)

    def conv1x1(x, w, b):
        w2 = w.reshape(C, C)
        return jnp.einsum("oc,bchw->bohw", w2, x) + b.reshape(1, C, 1, 1)

    q = conv1x1(query, params["wq"], params["bq"]).reshape(B, C, -1).transpose(0, 2, 1)
    k = conv1x1(key, params["wk"], params["bk"]).reshape(B, C, -1).transpose(0, 2, 1)
    v = conv1x1(value, params["wv"], params["bv"]).reshape(B, C, -1).transpose(0, 2, 1)
    attn = jnp.einsum("bnc,bmc->bnm", q, k) / scale
    attn = jax.nn.softmax(attn, axis=-1)
    out = jnp.einsum("bnm,bmc->bnc", attn, v)
    return out.transpose(0, 2, 1).reshape(B, C, H, W)


if __name__ == "__main__":
    root = jax.random.PRNGKey(0)

    def check(case_key, B, C, H, W, *, matmul_dtype, kv_block_size, atol, rtol):
        kq, kk, kv_, kp = jax.random.split(case_key, 4)
        query = jax.random.normal(kq, (B, C, H, W), jnp.float32)
        key_in = jax.random.normal(kk, (B, C, H, W), jnp.float32)
        value = jax.random.normal(kv_, (B, C, H, W), jnp.float32)
        params = init_params(kp, C)

        fn = jax.jit(lambda q, k, v: scaled_dot_product_attention(
            q, k, v, params,
            matmul_dtype=matmul_dtype, kv_block_size=kv_block_size))
        out = jax.block_until_ready(fn(query, key_in, value))
        ref = _reference(query, key_in, value, params)
        assert out.shape == (B, C, H, W)
        err = float(jnp.max(jnp.abs(out - ref)))
        assert jnp.allclose(out, ref, atol=atol, rtol=rtol), (
            f"mismatch (B={B},C={C},H={H},W={W},dt={matmul_dtype}): max|err|={err}")

    keys = jax.random.split(root, 3)
    # N = 64 -> padded to 128 (exercises padded-key masking), single KV block.
    check(keys[0], 2, 32, 8, 8, matmul_dtype=jnp.bfloat16, kv_block_size=512,
          atol=2e-2, rtol=2e-2)
    check(keys[0], 2, 32, 8, 8, matmul_dtype=None, kv_block_size=512,
          atol=1e-4, rtol=1e-4)
    # N = 256 with kv_block=128 -> 2 KV blocks (exercises the online softmax).
    check(keys[1], 2, 32, 16, 16, matmul_dtype=None, kv_block_size=128,
          atol=1e-4, rtol=1e-4)
    check(keys[2], 2, 32, 16, 16, matmul_dtype=jnp.bfloat16, kv_block_size=128,
          atol=2e-2, rtol=2e-2)

    print("KERNEL_OK")
</pallas_src>

<mosaic_0001>
module attributes {stable_mosaic.version = 11 : i64} {
  func.func @kernel(%arg0: i32, %arg1: i32, %arg2: memref<1x32x128xf32, #tpu.memory_space<vmem>>, %arg3: memref<1x32x128xf32, #tpu.memory_space<vmem>>, %arg4: memref<1x32x128xf32, #tpu.memory_space<vmem>>, %arg5: memref<32x32xbf16, #tpu.memory_space<vmem>>, %arg6: memref<32x32xbf16, #tpu.memory_space<vmem>>, %arg7: memref<32x32xbf16, #tpu.memory_space<vmem>>, %arg8: memref<32x3xf32, #tpu.memory_space<vmem>>, %arg9: memref<1x32x128xf32, #tpu.memory_space<vmem>>, %arg10: memref<32x128xbf16, #tpu.memory_space<vmem>>, %arg11: memref<32x128xf32, #tpu.memory_space<vmem>>, %arg12: memref<1x128xf32, #tpu.memory_space<vmem>>, %arg13: memref<1x128xf32, #tpu.memory_space<vmem>>) attributes {dimension_semantics = [#tpu.dimension_semantics<parallel>, #tpu.dimension_semantics<arbitrary>], iteration_bounds = array<i64: 2, 1>, scalar_prefetch = 0 : i64, scratch_operands = 4 : i64, tpu.core_type = #tpu.core_type<tc>, window_params = [{transform_indices = @transform_0, window_bounds = array<i64: 1, 32, 128>}, {transform_indices = @transform_1, window_bounds = array<i64: 1, 32, 128>}, {transform_indices = @transform_2, window_bounds = array<i64: 1, 32, 128>}, {pipeline_mode = #tpu.pipeline_mode<synchronous>, transform_indices = @transform_3, window_bounds = array<i64: 32, 32>}, {pipeline_mode = #tpu.pipeline_mode<synchronous>, transform_indices = @transform_4, window_bounds = array<i64: 32, 32>}, {pipeline_mode = #tpu.pipeline_mode<synchronous>, transform_indices = @transform_5, window_bounds = array<i64: 32, 32>}, {pipeline_mode = #tpu.pipeline_mode<synchronous>, transform_indices = @transform_6, window_bounds = array<i64: 32, 3>}, {transform_indices = @transform_7, window_bounds = array<i64: 1, 32, 128>}]} {
    %c0_i32 = arith.constant 0 : i32
    %0 = arith.cmpi eq, %arg1, %c0_i32 : i32
    %1 = arith.extui %0 : i1 to i32
    %c0_i32_0 = arith.constant 0 : i32
    %2 = arith.cmpi ne, %1, %c0_i32_0 : i32
    scf.if %2 {
      %c0_34 = arith.constant 0 : index
      %c0_35 = arith.constant 0 : index
      %59 = vector.load %arg5[%c0_34, %c0_35] : memref<32x32xbf16, #tpu.memory_space<vmem>>, vector<32x32xbf16>
      %c0_36 = arith.constant 0 : index
      %c0_37 = arith.constant 0 : index
      %c0_38 = arith.constant 0 : index
      %60 = vector.load %arg2[%c0_36, %c0_37, %c0_38] : memref<1x32x128xf32, #tpu.memory_space<vmem>>, vector<1x32x128xf32>
      %61 = vector.shape_cast %60 : vector<1x32x128xf32> to vector<32x128xf32>
      %62 = arith.truncf %61 : vector<32x128xf32> to vector<32x128xbf16>
      %cst_39 = arith.constant dense<0.000000e+00> : vector<32x128xf32>
      %63 = tpu.matmul %59, %62, %cst_39 {dimension_numbers = #tpu.dot_dimension_numbers<[1], [0], [0], [1], [0, 0, 1, 1], [], []>} : vector<32x32xbf16>, vector<32x128xbf16>, vector<32x128xf32> -> vector<32x128xf32>
      %c0_40 = arith.constant 0 : index
      %c0_41 = arith.constant 0 : index
      %64 = vector.load %arg8[%c0_40, %c0_41] : memref<32x3xf32, #tpu.memory_space<vmem>>, vector<32x1xf32>
      %65 = vector.broadcast %64 : vector<32x1xf32> to vector<32x128xf32>
      %66 = arith.addf %63, %65 : vector<32x128xf32>
      %67 = arith.truncf %66 : vector<32x128xf32> to vector<32x128xbf16>
      %c0_42 = arith.constant 0 : index
      %c0_43 = arith.constant 0 : index
      %68 = vector.load %arg10[%c0_42, %c0_43] : memref<32x128xbf16, #tpu.memory_space<vmem>>, vector<32x128xbf16>
      tpu.vector_store %arg10[%c0_42, %c0_43], %67 {strides = array<i32>} : memref<32x128xbf16, #tpu.memory_space<vmem>>, vector<32x128xbf16>,
      %cst_44 = arith.constant -1.000000e+30 : f32
      %69 = vector.broadcast %cst_44 : f32 to vector<1x128xf32>
      %c0_45 = arith.constant 0 : index
      %c0_46 = arith.constant 0 : index
      %70 = vector.load %arg12[%c0_45, %c0_46] : memref<1x128xf32, #tpu.memory_space<vmem>>, vector<1x128xf32>
      tpu.vector_store %arg12[%c0_45, %c0_46], %69 {strides = array<i32>} : memref<1x128xf32, #tpu.memory_space<vmem>>, vector<1x128xf32>,
      %cst_47 = arith.constant 0.000000e+00 : f32
      %71 = vector.broadcast %cst_47 : f32 to vector<1x128xf32>
      %c0_48 = arith.constant 0 : index
      %c0_49 = arith.constant 0 : index
      %72 = vector.load %arg13[%c0_48, %c0_49] : memref<1x128xf32, #tpu.memory_space<vmem>>, vector<1x128xf32>
      tpu.vector_store %arg13[%c0_48, %c0_49], %71 {strides = array<i32>} : memref<1x128xf32, #tpu.memory_space<vmem>>, vector<1x128xf32>,
      %cst_50 = arith.constant 0.000000e+00 : f32
      %73 = vector.broadcast %cst_50 : f32 to vector<32x128xf32>
      %c0_51 = arith.constant 0 : index
      %c0_52 = arith.constant 0 : index
      %74 = vector.load %arg11[%c0_51, %c0_52] : memref<32x128xf32, #tpu.memory_space<vmem>>, vector<32x128xf32>
      tpu.vector_store %arg11[%c0_51, %c0_52], %73 {strides = array<i32>} : memref<32x128xf32, #tpu.memory_space<vmem>>, vector<32x128xf32>,
    } else {
    }
    %c0 = arith.constant 0 : index
    %c0_1 = arith.constant 0 : index
    %3 = vector.load %arg6[%c0, %c0_1] : memref<32x32xbf16, #tpu.memory_space<vmem>>, vector<32x32xbf16>
    %c0_2 = arith.constant 0 : index
    %c0_3 = arith.constant 0 : index
    %c0_4 = arith.constant 0 : index
    %4 = vector.load %arg3[%c0_2, %c0_3, %c0_4] : memref<1x32x128xf32, #tpu.memory_space<vmem>>, vector<1x32x128xf32>
    %5 = vector.shape_cast %4 : vector<1x32x128xf32> to vector<32x128xf32>
    %6 = arith.truncf %5 : vector<32x128xf32> to vector<32x128xbf16>
    %cst = arith.constant dense<0.000000e+00> : vector<32x128xf32>
    %7 = tpu.matmul %3, %6, %cst {dimension_numbers = #tpu.dot_dimension_numbers<[1], [0], [0], [1], [0, 0, 1, 1], [], []>} : vector<32x32xbf16>, vector<32x128xbf16>, vector<32x128xf32> -> vector<32x128xf32>
    %c0_5 = arith.constant 0 : index
    %c1 = arith.constant 1 : index
    %8 = vector.load %arg8[%c0_5, %c1] : memref<32x3xf32, #tpu.memory_space<vmem>>, vector<32x1xf32>
    %9 = vector.broadcast %8 : vector<32x1xf32> to vector<32x128xf32>
    %10 = arith.addf %7, %9 : vector<32x128xf32>
    %c0_6 = arith.constant 0 : index
    %c0_7 = arith.constant 0 : index
    %11 = vector.load %arg7[%c0_6, %c0_7] : memref<32x32xbf16, #tpu.memory_space<vmem>>, vector<32x32xbf16>
    %c0_8 = arith.constant 0 : index
    %c0_9 = arith.constant 0 : index
    %c0_10 = arith.constant 0 : index
    %12 = vector.load %arg4[%c0_8, %c0_9, %c0_10] : memref<1x32x128xf32, #tpu.memory_space<vmem>>, vector<1x32x128xf32>
    %13 = vector.shape_cast %12 : vector<1x32x128xf32> to vector<32x128xf32>
    %14 = arith.truncf %13 : vector<32x128xf32> to vector<32x128xbf16>
    %cst_11 = arith.constant dense<0.000000e+00> : vector<32x128xf32>
    %15 = tpu.matmul %11, %14, %cst_11 {dimension_numbers = #tpu.dot_dimension_numbers<[1], [0], [0], [1], [0, 0, 1, 1], [], []>} : vector<32x32xbf16>, vector<32x128xbf16>, vector<32x128xf32> -> vector<32x128xf32>
    %c0_12 = arith.constant 0 : index
    %c2 = arith.constant 2 : index
    %16 = vector.load %arg8[%c0_12, %c2] : memref<32x3xf32, #tpu.memory_space<vmem>>, vector<32x1xf32>
    %17 = vector.broadcast %16 : vector<32x1xf32> to vector<32x128xf32>
    %18 = arith.addf %15, %17 : vector<32x128xf32>
    %19 = arith.truncf %10 : vector<32x128xf32> to vector<32x128xbf16>
    %20 = arith.truncf %18 : vector<32x128xf32> to vector<32x128xbf16>
    %c0_13 = arith.constant 0 : index
    %c0_14 = arith.constant 0 : index
    %21 = vector.load %arg10[%c0_13, %c0_14] : memref<32x128xbf16, #tpu.memory_space<vmem>>, vector<32x128xbf16>
    %cst_15 = arith.constant dense<0.000000e+00> : vector<128x128xf32>
    %22 = tpu.matmul %19, %21, %cst_15 {dimension_numbers = #tpu.dot_dimension_numbers<[0], [0], [1], [1], [0, 1, 1, 1], [], []>} : vector<32x128xbf16>, vector<32x128xbf16>, vector<128x128xf32> -> vector<128x128xf32>
    %c128_i32 = arith.constant 128 : i32
    %23 = arith.muli %arg1, %c128_i32 : i32
    %24 = tpu.iota {dimensions = array<i32: 0>} : vector<128x1xi32>
    %25 = vector.broadcast %23 : i32 to vector<128x1xi32>
    %26 = arith.addi %25, %24 : vector<128x1xi32>
    %c64_i32 = arith.constant 64 : i32
    %27 = vector.broadcast %c64_i32 : i32 to vector<128x1xi32>
    %28 = arith.cmpi slt, %26, %27 : vector<128x1xi32>
    %cst_16 = arith.constant -1.000000e+30 : f32
    %29 = vector.shape_cast %28 : vector<128x1xi1> to vector<128x1xi1>
    %30 = vector.broadcast %29 : vector<128x1xi1> to vector<128x128xi1>
    %31 = vector.broadcast %cst_16 : f32 to vector<128x128xf32>
    %32 = arith.select %30, %22, %31 : vector<128x128xi1>, vector<128x128xf32>
    %c0_17 = arith.constant 0 : index
    %c0_18 = arith.constant 0 : index
    %33 = vector.load %arg12[%c0_17, %c0_18] : memref<1x128xf32, #tpu.memory_space<vmem>>, vector<1x128xf32>
    %cst_19 = arith.constant dense<0xFF800000> : vector<128xf32>
    %34 = vector.multi_reduction <maximumf>, %32, %cst_19 [0] : vector<128x128xf32> to vector<128xf32>
    %35 = vector.shape_cast %34 : vector<128xf32> to vector<1x128xf32>
    %36 = arith.maximumf %33, %35 : vector<1x128xf32>
    %37 = arith.subf %33, %36 : vector<1x128xf32>
    %38 = math.exp %37 : vector<1x128xf32>
    %39 = vector.broadcast %36 : vector<1x128xf32> to vector<128x128xf32>
    %40 = arith.subf %32, %39 : vector<128x128xf32>
    %41 = math.exp %40 : vector<128x128xf32>
    %c0_20 = arith.constant 0 : index
    %c0_21 = arith.constant 0 : index
    %42 = vector.load %arg13[%c0_20, %c0_21] : memref<1x128xf32, #tpu.memory_space<vmem>>, vector<1x128xf32>
    %43 = arith.mulf %38, %42 : vector<1x128xf32>
    %cst_22 = arith.constant dense<0.000000e+00> : vector<128xf32>
    %44 = vector.multi_reduction <add>, %41, %cst_22 [0] : vector<128x128xf32> to vector<128xf32>
    %45 = vector.shape_cast %44 : vector<128xf32> to vector<1x128xf32>
    %46 = arith.addf %43, %45 : vector<1x128xf32>
    %c0_23 = arith.constant 0 : index
    %c0_24 = arith.constant 0 : index
    %47 = vector.load %arg13[%c0_23, %c0_24] : memref<1x128xf32, #tpu.memory_space<vmem>>, vector<1x128xf32>
    tpu.vector_store %arg13[%c0_23, %c0_24], %46 {strides = array<i32>} : memref<1x128xf32, #tpu.memory_space<vmem>>, vector<1x128xf32>,
    %c0_25 = arith.constant 0 : index
    %c0_26 = arith.constant 0 : index
    %48 = vector.load %arg11[%c0_25, %c0_26] : memref<32x128xf32, #tpu.memory_space<vmem>>, vector<32x128xf32>
    %49 = vector.broadcast %38 : vector<1x128xf32> to vector<32x128xf32>
    %50 = arith.mulf %49, %48 : vector<32x128xf32>
    %51 = arith.truncf %41 : vector<128x128xf32> to vector<128x128xbf16>
    %cst_27 = arith.constant dense<0.000000e+00> : vector<32x128xf32>
    %52 = tpu.matmul %20, %51, %cst_27 {dimension_numbers = #tpu.dot_dimension_numbers<[1], [0], [0], [1], [0, 0, 1, 1], [], []>} : vector<32x128xbf16>, vector<128x128xbf16>, vector<32x128xf32> -> vector<32x128xf32>
    %53 = arith.addf %50, %52 : vector<32x128xf32>
    %c0_28 = arith.constant 0 : index
    %c0_29 = arith.constant 0 : index
    %54 = vector.load %arg11[%c0_28, %c0_29] : memref<32x128xf32, #tpu.memory_space<vmem>>, vector<32x128xf32>
    tpu.vector_store %arg11[%c0_28, %c0_29], %53 {strides = array<i32>} : memref<32x128xf32, #tpu.memory_space<vmem>>, vector<32x128xf32>,
    %c0_30 = arith.constant 0 : index
    %c0_31 = arith.constant 0 : index
    %55 = vector.load %arg12[%c0_30, %c0_31] : memref<1x128xf32, #tpu.memory_space<vmem>>, vector<1x128xf32>
    tpu.vector_store %arg12[%c0_30, %c0_31], %36 {strides = array<i32>} : memref<1x128xf32, #tpu.memory_space<vmem>>, vector<1x128xf32>,
    %c0_i32_32 = arith.constant 0 : i32
    %56 = arith.cmpi eq, %arg1, %c0_i32_32 : i32
    %57 = arith.extui %56 : i1 to i32
    %c0_i32_33 = arith.constant 0 : i32
    %58 = arith.cmpi ne, %57, %c0_i32_33 : i32
    scf.if %58 {
      %c0_34 = arith.constant 0 : index
      %c0_35 = arith.constant 0 : index
      %59 = vector.load %arg11[%c0_34, %c0_35] : memref<32x128xf32, #tpu.memory_space<vmem>>, vector<32x128xf32>
      %c0_36 = arith.constant 0 : index
      %c0_37 = arith.constant 0 : index
      %60 = vector.load %arg13[%c0_36, %c0_37] : memref<1x128xf32, #tpu.memory_space<vmem>>, vector<1x128xf32>
      %61 = tpu.reciprocal %60 : vector<1x128xf32> -> vector<1x128xf32>
      %62 = vector.broadcast %61 : vector<1x128xf32> to vector<32x128xf32>
      %63 = arith.mulf %59, %62 : vector<32x128xf32>
      %c0_38 = arith.constant 0 : index
      %c0_39 = arith.constant 0 : index
      %c0_40 = arith.constant 0 : index
      %64 = vector.load %arg9[%c0_38, %c0_39, %c0_40] : memref<1x32x128xf32, #tpu.memory_space<vmem>>, vector<1x32x128xf32>
      %65 = vector.shape_cast %64 : vector<1x32x128xf32> to vector<32x128xf32>
      %66 = vector.shape_cast %63 : vector<32x128xf32> to vector<1x32x128xf32>
      tpu.vector_store %arg9[%c0_38, %c0_39, %c0_40], %66 {strides = array<i32>} : memref<1x32x128xf32, #tpu.memory_space<vmem>>, vector<1x32x128xf32>,
    } else {
    }
    return
  }
  func.func @transform_0(%arg0: i32, %arg1: i32) -> (i32, i32, i32) {
    %c0_i32 = arith.constant 0 : i32
    %c0_i32_0 = arith.constant 0 : i32
    %c0_i32_1 = arith.constant 0 : i32
    return %arg0, %c0_i32, %c0_i32_0 : i32, i32, i32
  }
  func.func @transform_1(%arg0: i32, %arg1: i32) -> (i32, i32, i32) {
    %c0_i32 = arith.constant 0 : i32
    %c0_i32_0 = arith.constant 0 : i32
    return %arg0, %c0_i32, %arg1 : i32, i32, i32
  }
  func.func @transform_2(%arg0: i32, %arg1: i32) -> (i32, i32, i32) {
    %c0_i32 = arith.constant 0 : i32
    %c0_i32_0 = arith.constant 0 : i32
    return %arg0, %c0_i32, %arg1 : i32, i32, i32
  }
  func.func @transform_3(%arg0: i32, %arg1: i32) -> (i32, i32) {
    %c0_i32 = arith.constant 0 : i32
    %c0_i32_0 = arith.constant 0 : i32
    %c0_i32_1 = arith.constant 0 : i32
    return %c0_i32, %c0_i32_0 : i32, i32
  }
  func.func @transform_4(%arg0: i32, %arg1: i32) -> (i32, i32) {
    %c0_i32 = arith.constant 0 : i32
    %c0_i32_0 = arith.constant 0 : i32
    %c0_i32_1 = arith.constant 0 : i32
    return %c0_i32, %c0_i32_0 : i32, i32
  }
  func.func @transform_5(%arg0: i32, %arg1: i32) -> (i32, i32) {
    %c0_i32 = arith.constant 0 : i32
    %c0_i32_0 = arith.constant 0 : i32
    %c0_i32_1 = arith.constant 0 : i32
    return %c0_i32, %c0_i32_0 : i32, i32
  }
  func.func @transform_6(%arg0: i32, %arg1: i32) -> (i32, i32) {
    %c0_i32 = arith.constant 0 : i32
    %c0_i32_0 = arith.constant 0 : i32
    %c0_i32_1 = arith.constant 0 : i32
    return %c0_i32, %c0_i32_0 : i32, i32
  }
  func.func @transform_7(%arg0: i32, %arg1: i32) -> (i32, i32, i32) {
    %c0_i32 = arith.constant 0 : i32
    %c0_i32_0 = arith.constant 0 : i32
    %c0_i32_1 = arith.constant 0 : i32
    return %arg0, %c0_i32, %c0_i32_0 : i32, i32, i32
  }
}

</mosaic_0001>

<bundles_post_ra>
// kernel: _lambda_.1
= control target key start
LH: loop header
LB: loop body
LE: loop exit
PB: predicated region body
PF: predicated region fallthrough
CT: control target
= control target key end

     0   :  { %s1474_s24 = smov 0   ;;  %s1476_s25 = smov 0   ;;  %s1601_s0 = inlined_call_operand.vmem [shape: f32[2,32,128], index: 0, kind: input, shape index: {}]   ;;  %s1602_s1 = inlined_call_operand.vmem [shape: f32[2,32,128], index: 1, kind: input, shape index: {}]   ;;  %s1603_s2 = inlined_call_operand.vmem [shape: f32[2,32,128], index: 2, kind: input, shape index: {}]   ;;  %s1604_s3 = inlined_call_operand.vmem [shape: bf16[32,32], index: 3, kind: input, shape index: {}]   ;;  %s1605_s4 = inlined_call_operand.vmem [shape: bf16[32,32], index: 4, kind: input, shape index: {}]   ;;  %s1606_s5 = inlined_call_operand.vmem [shape: bf16[32,32], index: 5, kind: input, shape index: {}]   ;;  %s1607_s6 = inlined_call_operand.vmem [shape: f32[32,3], index: 6, kind: input, shape index: {}]   ;;  %s1608_s7 = inlined_call_operand.vmem [shape: f32[2,32,128], index: 7, kind: output, shape index: {}]  }
   0x1   :  { %s1478_s26 = smov 0  }
   0x2 LB: > { %s29_s27 = sadd.s32 1, %s1423_s25  ;;  %p1212_p0 = scmp.ge.s32.totalorder %s1427_s26, 1  ;;  %s1427_s26 = sphi %s1478_s26, %s17_s26   ;;  %s1423_s25 = sphi %s1476_s25, %s1610_s25   ;;  %s1419_s24 = sphi %s1474_s24, %s1609_s24  }
   0x3   : > { %p31_p1 = scmp.ge.s32.totalorder %s29_s27, 2  ;;  %p279_p2 = scmp.lt.s32.totalorder %s1427_s26, 3 }
   0x5   : > { %s1612_s27 = smov (%p31_p1, %s29_s27), 0  ;;  %p280_p3 = pnand %p1212_p0, %p279_p2 }
   0x6   : > { %p327_p4 = scmp.lt.s32.totalorder (!%p280_p3), %s1419_s24, 1  ;;  %vm402_vm0 = vcmask (!%p280_p3), 261120   ;;  %v1377_v0 = vld [vmem:[%s1605_s4] sm:$0xff] (!%p280_p3)   ;;  %v1429_v1 = vmov (!%p280_p3), 1   ;;  %v1501_v3 = vld [vmem:[%s1607_s6 + $0x10] sm:$0xff] (!%p280_p3)  ;;  %v1507_v4 = vld [vmem:[%s1607_s6 + $0x8] sm:$0xff] (!%p280_p3) }
   0x7   : > { %283 = sbr.rel (%p280_p3) target bundleno = 873 (0x369), region = 48  ;;  %1372 = vset.pattern.permute.xlu0 (!%p280_p3), %v1429_v1  ;;  %v478_v2 = vld [vmem:[%s1607_s6] sm:$0xff] (!%p280_p3)  ;;  %1373 = vset.pattern.permute.xlu1 (!%p280_p3), %v1429_v1  ;;  %v1526_v6 = vld [vmem:[%s1607_s6 + $0x18] sm:$0xff] (!%p280_p3)  ;;  %v1430_v19 = vmov (!%p280_p3), 0   ;;  %v1378_v20 = vld [vmem:[%s1605_s4 + $0x8] sm:$0xff] (!%p280_p3)   ;;  %v1431_v32 = vmov (!%p280_p3), 2  }
   0x8   : > { %1291 = vmatprep.mubr.msk.bf16.mxu1 (!%p280_p3), %vm402_vm0, %v1377_v0  ;;  %484 = vperm.xlu0 (!%p280_p3), %1372, %v478_v2   ;;  %v1379_v5 = vld [vmem:[%s1604_s3] sm:$0xff] (!%p280_p3)   ;;  %v1380_v21 = vld [vmem:[%s1604_s3 + $0x8] sm:$0xff] (!%p280_p3)   ;;  %v1432_v63 = vmov (!%p280_p3), -1e+30   ;;  %v1433_v0 = vmov (!%p280_p3), 0.0  }
   0x9   : > { %494 = vperm.xlu1 (!%p280_p3), %1373, %v1501_v3   ;;  %1283 = vmatprep.mubr.msk.bf16.mxu0 (!%p280_p3), %vm402_vm0, %v1379_v5  ;;  %v1381_v28 = vld [vmem:[%s1606_s5] sm:$0xff] (!%p280_p3)   ;;  %v1382_v49 = vld [vmem:[%s1606_s5 + $0x8] sm:$0xff] (!%p280_p3)   ;;  %462 = vst [vmem:[#allocation4] sm:$0x1] (!%p280_p3), %v1432_v63  ;;  %463 = vst [vmem:[#allocation5] sm:$0x1] (!%p280_p3), %v1433_v0 }
   0xc   : > { %489 = vperm.xlu0 (!%p280_p3), %1372, %v1507_v4  }
   0xd   : > { %499 = vperm.xlu1 (!%p280_p3), %1373, %v1526_v6  }
   0xe   : > { %s1614_s24 = smov (!%p327_p4, %s1419_s24), 1 }
   0xf   : > { %s1509_s13 = sshll.u32 %s1614_s24, 5 }
  0x10   : > { %s339_s18 = scalar_lea.vmem %s1602_s1, %s1509_s13  ;;  %s331_s21 = scalar_lea.vmem %s1601_s0, %s1509_s13  ;;  %1374 = vset.pattern.permute.xlu0 %v1430_v19 }
  0x11   : > { %v472_v7 = vld [vmem:[%s339_s18] sm:$0xff]  ;;  %v473_v8 = vld [vmem:[%s339_s18 + $0x8] sm:$0xff]  ;;  %v474_v9 = vld [vmem:[%s339_s18 + $0x10] sm:$0xff]  ;;  %1375 = vset.pattern.permute.xlu1 %v1430_v19  ;;  %374 = vperm.xlu0 %1374, %v478_v2   ;;  %s347_s10 = scalar_lea.vmem %s1603_s2, %s1509_s13 }
  0x12   : > { %v476_v10 = vpack.c.bf16 %v473_v8, %v472_v7  ;;  %v475_v11 = vld [vmem:[%s339_s18 + $0x18] sm:$0xff]  ;;  %v362_v12 = vld [vmem:[%s331_s21] sm:$0xff]  ;;  %v363_v13 = vld [vmem:[%s331_s21 + $0x8] sm:$0xff]  ;;  %379 = vperm.xlu1 %1375, %v1507_v4   ;;  %s352_s18 = scalar_lea.vmem %s1608_s7, %s1509_s13 }
  0x13   : > { %v477_v14 = vpack.c.bf16 %v475_v11, %v474_v9  ;;  %v366_v15 = vpack.c.bf16 %v363_v13, %v362_v12  ;;  %v364_v16 = vld [vmem:[%s331_s21 + $0x10] sm:$0xff]  ;;  %v365_v17 = vld [vmem:[%s331_s21 + $0x18] sm:$0xff]  ;;  %v572_v29 = vld [vmem:[%s347_s10] sm:$0xff] }
  0x14   : > { %1287 = vmatprep.subr.bf16.mxu1 %v476_v10  ;;  %v367_v18 = vpack.c.bf16 %v365_v17, %v364_v16  ;;  %v573_v30 = vld [vmem:[%s347_s10 + $0x8] sm:$0xff]  ;;  %v574_v31 = vld [vmem:[%s347_s10 + $0x10] sm:$0xff]  ;;  %v575_v34 = vld [vmem:[%s347_s10 + $0x18] sm:$0xff] }
  0x15   : > { %1288 = vmatpush3.bf16.msra.mxu1 %v476_v10  ;;  %1279 = vmatprep.subr.bf16.mxu0 %v366_v15  ;;  %v576_v33 = vpack.c.bf16 %v573_v30, %v572_v29  ;;  %v577_v35 = vpack.c.bf16 %v575_v34, %v574_v31 }
  0x16   : > { %1289 = vmatprep.subr.bf16.mxu1 %v477_v14  ;;  %1280 = vmatpush3.bf16.msra.mxu0 %v366_v15 }
  0x17   : > { %1281 = vmatprep.subr.bf16.mxu0 %v367_v18  ;;  %384 = vperm.xlu1 %1375, %v1501_v3  }
  0x18   : > { %389 = vperm.xlu0 %1374, %v1526_v6  }
  0x19   : > { %1290 = vmatpush3.bf16.msra.mxu1 %v477_v14 }
  0x1a   : > { %1282 = vmatpush3.bf16.msra.mxu0 %v367_v18 }
  0x1b   : > { %1295 = vmatprep.subr.bf16.mxu0 %v576_v33 }
  0x1c   : > { %1292 = vmatmul.mubr.msk.bf16.vlgmr.msra.gmra.mrb[0].mxu1 %vm402_vm0, %v1378_v20  ;;  %1376 = vset.pattern.permute.xlu0 %v1431_v32 }
  0x1d   : > { %1284 = vmatmul.mubr.msk.bf16.vlgmr.msra.gmra.mrb[0].mxu0 %vm402_vm0, %v1380_v21  ;;  %579 = vperm.xlu0 %1376, %v478_v2  }
  0x1e   : > { %1299 = vmatprep.mubr.msk.bf16.mxu0 %vm402_vm0, %v1381_v28  ;;  %1296 = vmatpush3.bf16.msra.mxu0 %v576_v33 }
  0x1f   : > { %1297 = vmatprep.subr.bf16.mxu0 %v577_v35 }
  0x21   : > { %583 = vperm.xlu0 %1376, %v1507_v4  }
  0x22   : > { %1298 = vmatpush3.bf16.msra.mxu0 %v577_v35 }
  0x25   : > { %587 = vperm.xlu0 %1376, %v1501_v3   ;;  %1300 = vmatmul.mubr.msk.bf16.vlgmr.msra.gmra.mrb[4].mxu0 %vm402_vm0, %v1382_v49  ;;  %v1571_v49 = vld [vmem:[#allocation4] sm:$0x1] }
  0x29   : > { %591 = vperm.xlu0 %1376, %v1526_v6  }
  0x87   : > { %v485_v23 = vpop.permute.xlu0 %484 }
  0x88   : > { %v495_v22 = vpop.permute.xlu1 %494 }
  0x8b   : > { %v490_v25 = vpop.permute.xlu0 %489 }
  0x8c   : > { %v500_v24 = vpop.permute.xlu1 %499 }
  0x90   : > { %v375_v27 = vpop.permute.xlu0 %374 }
  0x91   : > { %v380_v26 = vpop.permute.xlu1 %379 }
  0x96   : > { %v385_v36 = vpop.permute.xlu1 %384 }
  0x97   : > { %v390_v38 = vpop.permute.xlu0 %389 }
  0x9c   : > { %v580_v1 = vpop.permute.xlu0 %579 }
  0xa0   : > { %v584_v2 = vpop.permute.xlu0 %583 }
  0xa4   : > { %v588_v3 = vpop.permute.xlu0 %587 }
  0xa8   : > { %v592_v7 = vpop.permute.xlu0 %591 }
  0xef   : > { %v1293_v37 = vpop.f32.mrb[0].mxu1 }
  0xf0   : > { %v553_v39 = vpop.f32.mrb[1].mxu1  ;;  %v1285_v40 = vpop.f32.mrb[0].mxu0  ;;  %v562_v44 = vadd.f32 %v1293_v37, %v495_v22 }
  0xf1   : > { %v1294_v41 = vpop.f32.mrb[2].mxu1  ;;  %v443_v42 = vpop.f32.mrb[1].mxu0  ;;  %v452_v43 = vadd.f32 %v1285_v40, %v385_v36  ;;  %v554_v50 = vadd.f32 %v553_v39, %v485_v23 }
  0xf2   : > { %v565_v45 = vadd.f32 %v1294_v41, %v500_v24  ;;  %v556_v46 = vpop.f32.mrb[3].mxu1  ;;  %v1286_v47 = vpop.f32.mrb[2].mxu0  ;;  %v444_v48 = vadd.f32 %v443_v42, %v375_v27 }
  0xf3   : > { %v557_v51 = vadd.f32 %v556_v46, %v490_v25  ;;  %v446_v52 = vpop.f32.mrb[3].mxu0  ;;  %v455_v53 = vadd.f32 %v1286_v47, %v390_v38 }
  0xf4   : > { %v660_v54 = vpack.c.bf16 %v565_v45, %v562_v44  ;;  %v447_v55 = vadd.f32 %v446_v52, %v380_v26  ;;  %v928_v44 = vlaneseq }
  0xf5   : > { %v659_v56 = vpack.c.bf16 %v557_v51, %v554_v50  ;;  %v459_v57 = vpack.c.bf16 %v455_v53, %v452_v43 }
  0xf6   : > { %v458_v58 = vpack.c.bf16 %v447_v55, %v444_v48  ;;  %v929_v47 = vshrl.u32 %v928_v44, 7 }
  0xf7   : > { %665 = vxpose.xlu1.c.b16.start [1/2] (short) %v659_v56, 128 }
  0xf8   : > { %1303 = vmatprep.subr.bf16.mxu1 %v458_v58  ;;  %v1301_v4 = vpop.f32.mrb[4].mxu0  ;;  %v1573_v51 = vsub.s32 0, %v929_v47  ;;  %v981_v47 = vld [vmem:[#allocation5] sm:$0x1] }
  0xf9   : > { %1304 = vmatpush3.bf16.msra.mxu1 %v458_v58  ;;  %v644_v5 = vpop.f32.mrb[5].mxu0  ;;  %v1561_v9 = vadd.f32 %v1301_v4, %v588_v3 }
  0xfa   : > { %1305 = vmatprep.subr.bf16.mxu1 %v459_v57  ;;  %v1302_v6 = vpop.f32.mrb[6].mxu0  ;;  %v645_v10 = vadd.f32 %v644_v5, %v580_v1 }
  0xfb   : > { %666 = vxpose.xlu1.c.b16.end [2/2] (short) %v660_v54, 128  ;;  %v647_v8 = vpop.f32.mrb[7].mxu0  ;;  %v1563_v11 = vadd.f32 %v1302_v6, %v592_v7 }
  0xfc   : > { %v648_v12 = vadd.f32 %v647_v8, %v584_v2 }
  0xfd   : > { %1306 = vmatpush3.bf16.msra.mxu1 %v459_v57  ;;  %v662_v14 = vpack.c.bf16 %v1563_v11, %v1561_v9 }
  0xfe   : > { %v661_v15 = vpack.c.bf16 %v648_v12, %v645_v10 }
 0x100   : > { %1339 = vmatprep.mubr.bf16.mxu0 %v661_v15 }
 0x15d   : > { %v673_v59 = vpop.trf.xlu1 }
 0x15e   : > { %1307 = vmatprep.mubr.msk.bf16.mxu1 %vm402_vm0, %v673_v59 }
 0x161   : > { %v674_v60 = vpop.trf.xlu1 }
 0x162   : > { %1308 = vmatmul.mubr.msk.bf16.vlgmr.msra.gmra.mrb[4].mxu1 %vm402_vm0, %v674_v60 }
 0x165   : > { %v675_v61 = vpop.trf.xlu1 }
 0x166   : > { %1311 = vmatprep.mubr.msk.bf16.mxu1 %vm402_vm0, %v675_v61 }
 0x169   : > { %v676_v62 = vpop.trf.xlu1 }
 0x16a   : > { %1312 = vmatmul.mubr.msk.bf16.gmra.mrb[8].mxu1 %vm402_vm0, %v676_v62 }
 0x16d   : > { %v677_v13 = vpop.trf.xlu1 }
 0x16e   : > { %1315 = vmatprep.mubr.msk.bf16.mxu1 %vm402_vm0, %v677_v13 }
 0x171   : > { %v678_v16 = vpop.trf.xlu1 }
 0x172   : > { %1316 = vmatmul.mubr.msk.bf16.gmra.mrb[12].mxu1 %vm402_vm0, %v678_v16 }
 0x175   : > { %v679_v17 = vpop.trf.xlu1 }
 0x176   : > { %1319 = vmatprep.mubr.msk.bf16.mxu1 %vm402_vm0, %v679_v17 }
 0x179   : > { %v680_v18 = vpop.trf.xlu1 }
 0x17a   : > { %1320 = vmatmul.mubr.msk.bf16.gmra.mrb[16].mxu1 %vm402_vm0, %v680_v18 }
 0x235   : > { %v1309_v19 = vpop.f32.mrb[4].mxu1 }
 0x236   : > { %v739_v20 = vpop.f32.mrb[5].mxu1 }
 0x237   : > { %v1310_v21 = vpop.f32.mrb[6].mxu1 }
 0x238   : > { %v742_v22 = vpop.f32.mrb[7].mxu1 }
 0x23d   : > { %v1313_v23 = vpop.f32.mrb[8].mxu1 }
 0x23e   : > { %v904_v24 = vmax.f32 %v1309_v19, %v1313_v23  ;;  %v755_v25 = vpop.f32.mrb[9].mxu1 }
 0x23f   : > { %v902_v26 = vmax.f32 %v739_v20, %v755_v25  ;;  %v1314_v27 = vpop.f32.mrb[10].mxu1 }
 0x240   : > { %v908_v28 = vmax.f32 %v904_v24, -1e+30  ;;  %v905_v29 = vmax.f32 %v1310_v21, %v1314_v27  ;;  %v758_v30 = vpop.f32.mrb[11].mxu1 }
 0x241   : > { %v906_v31 = vmax.f32 %v902_v26, -1e+30  ;;  %v903_v32 = vmax.f32 %v742_v22, %v758_v30 }
 0x242   : > { %v909_v33 = vmax.f32 %v905_v29, -1e+30  ;;  %v912_v35 = vmax.f32 %v908_v28, -1e+30 }
 0x243   : > { %v907_v34 = vmax.f32 %v903_v32, -1e+30  ;;  %v910_v37 = vmax.f32 %v906_v31, -1e+30 }
 0x244   : > { %v913_v36 = vmax.f32 %v909_v33, -1e+30 }
 0x245   : > { %v911_v38 = vmax.f32 %v907_v34, -1e+30 }
 0x246   : > { %v915_v39 = vmax.f32 %v912_v35, %v913_v36 }
 0x247   : > { %v914_v40 = vmax.f32 %v910_v37, %v911_v38 }
 0x249   : > { %v916_v41 = vmax.f32 %v914_v40, %v915_v39 }
 0x24b   : > { %v917_v42 = vrot.slane %v916_v41, 4 }
 0x24d   : > { %v918_v43 = vmax.f32 %v916_v41, %v917_v42 }
 0x24f   : > { %v919_v45 = vrot.slane %v918_v43, 2 }
 0x251   : > { %v920_v46 = vmax.f32 %v918_v43, %v919_v45 }
 0x253   : > { %v921_v48 = vrot.slane %v920_v46, 1 }
 0x255   : > { %v922_v50 = vmax.f32 %v920_v46, %v921_v48 }
 0x257   : > { %v1576_v52 = vmax.f32 %v1571_v49, %v922_v50 }
 0x259   : > { %v931_v53 = vrot.slane %v1576_v52, %v1573_v51  ;;  %1085 = vst [vmem:[#allocation4] sm:$0x1] %v1576_v52  ;;  %v924_v35 = vsub.f32 %v1571_v49, %v1576_v52 }
 0x25b   : > { %v933_v54 = vsub.f32 %v739_v20, %v931_v53  ;;  %v934_v55 = vsub.f32 %v742_v22, %v931_v53  ;;  %v935_v56 = vsub.f32 %v1309_v19, %v931_v53  ;;  %v936_v57 = vsub.f32 %v1310_v21, %v931_v53 }
 0x25c   : > { %v937_v58 = vsub.f32 %v755_v25, %v931_v53  ;;  %v938_v59 = vsub.f32 %v758_v30, %v931_v53  ;;  %v939_v63 = vsub.f32 %v1313_v23, %v931_v53  ;;  %v940_v1 = vsub.f32 %v1314_v27, %v931_v53 }
 0x25d   : > { %v949_v60 = vmul.f32 1.442695, %v933_v54  ;;  %v951_v61 = vmul.f32 1.442695, %v934_v55  ;;  %v953_v62 = vmul.f32 1.442695, %v935_v56 }
 0x25e   : > { %v955_v0 = vmul.f32 1.442695, %v936_v57  ;;  %v957_v2 = vmul.f32 1.442695, %v937_v58  ;;  %v959_v3 = vmul.f32 1.442695, %v938_v59 }
 0x25f   : > { %1383 = vpow2.f32 %v949_v60  ;;  %v961_v4 = vmul.f32 1.442695, %v939_v63  ;;  %v963_v5 = vmul.f32 1.442695, %v940_v1  ;;  %v941_v6 = vsub.f32 -1e+30, %v931_v53 }
 0x260   : > { %1385 = vpow2.f32 %v951_v61  ;;  %v925_v38 = vmul.f32 1.442695, %v924_v35  ;;  %v1317_v53 = vpop.f32.mrb[12].mxu1 }
 0x261   : > { %1387 = vpow2.f32 %v953_v62  ;;  %v965_v7 = vmul.f32 1.442695, %v941_v6  ;;  %v771_v54 = vpop.f32.mrb[13].mxu1 }
 0x262   : > { %1389 = vpow2.f32 %v955_v0  ;;  %v1318_v55 = vpop.f32.mrb[14].mxu1 }
 0x263   : > { %1391 = vpow2.f32 %v957_v2  ;;  %v774_v56 = vpop.f32.mrb[15].mxu1 }
 0x264   : > { %1393 = vpow2.f32 %v959_v3  ;;  %v1321_v57 = vpop.f32.mrb[16].mxu1 }
 0x265   : > { %1395 = vpow2.f32 %v961_v4  ;;  %v787_v58 = vpop.f32.mrb[17].mxu1 }
 0x266   : > { %1397 = vpow2.f32 %v963_v5  ;;  %v1322_v59 = vpop.f32.mrb[18].mxu1 }
 0x267   : > { %1399 = vpow2.f32 %v965_v7  ;;  %v790_v60 = vpop.f32.mrb[19].mxu1 }
 0x268   : > { %1401 = vpow2.f32 %v925_v38 }
 0x269   : > { %v1384_v8 = vpop.eup %1383 }
 0x26a   : > { %v1386_v10 = vpop.eup %1385 }
 0x26b   : > { %v1388_v12 = vpop.eup %1387  ;;  %v983_v13 = vadd.f32 %v1386_v10, %v1384_v8  ;;  %v1020_v15 = vpack.c.bf16 %v1386_v10, %v1384_v8 }
 0x26c   : > { %v1390_v16 = vpop.eup %1389 }
 0x26d   : > { %v1392_v17 = vpop.eup %1391  ;;  %v984_v18 = vadd.f32 %v1388_v12, %v983_v13  ;;  %1323 = vmatprep.subr.bf16.mxu0 %v1020_v15  ;;  %v1021_v19 = vpack.c.bf16 %v1390_v16, %v1388_v12 }
 0x26e   : > { %v1394_v20 = vpop.eup %1393  ;;  %1324 = vmatpush3.bf16.msra.mxu0 %v1020_v15 }
 0x26f   : > { %v985_v21 = vadd.f32 %v1390_v16, %v984_v18  ;;  %1325 = vmatprep.subr.bf16.mxu0 %v1021_v19  ;;  %v1022_v22 = vpack.c.bf16 %v1394_v20, %v1392_v17  ;;  %v1396_v23 = vpop.eup %1395 }
 0x270   : > { %v1398_v24 = vpop.eup %1397 }
 0x271   : > { %v986_v25 = vadd.f32 %v1392_v17, %v985_v21  ;;  %v1023_v26 = vpack.c.bf16 %v1398_v24, %v1396_v23  ;;  %v1400_v29 = vpop.eup %1399 }
 0x272   : > { %1326 = vmatpush3.bf16.msra.mxu0 %v1021_v19  ;;  %v1024_v32 = vpack.c.bf16 %v1400_v29, %v1400_v29  ;;  %v1402_v46 = vpop.eup %1401 }
 0x273   : > { %v987_v27 = vadd.f32 %v1394_v20, %v986_v25  ;;  %1327 = vmatprep.subr.bf16.mxu0 %v1022_v22  ;;  %v982_v49 = vmul.f32 %v1402_v46, %v981_v47  ;;  %v1014_v11 = vrot.slane %v1402_v46, %v1573_v51 }
 0x275   : > { %v988_v28 = vadd.f32 %v1396_v23, %v987_v27  ;;  %v1016_v61 = vmul.f32 0.0, %v1014_v11 }
 0x276   : > { %1328 = vmatpush3.bf16.msra.mxu0 %v1022_v22 }
 0x277   : > { %v989_v30 = vadd.f32 %v1398_v24, %v988_v28  ;;  %1329 = vmatprep.subr.bf16.mxu0 %v1023_v26 }
 0x279   : > { %v990_v31 = vadd.f32 %v1400_v29, %v989_v30 }
 0x27a   : > { %1330 = vmatpush3.bf16.msra.mxu0 %v1023_v26 }
 0x27b   : > { %v991_v33 = vadd.f32 %v1400_v29, %v990_v31  ;;  %1331 = vmatprep.subr.bf16.mxu0 %v1024_v32 }
 0x27d   : > { %v992_v34 = vadd.f32 %v1400_v29, %v991_v33 }
 0x27e   : > { %1332 = vmatpush3.bf16.msra.mxu0 %v1024_v32 }
 0x27f   : > { %v993_v36 = vadd.f32 %v1400_v29, %v992_v34  ;;  %1333 = vmatprep.subr.bf16.mxu0 %v1024_v32 }
 0x281   : > { %v994_v37 = vadd.f32 %v1400_v29, %v993_v36 }
 0x282   : > { %1334 = vmatpush3.bf16.msra.mxu0 %v1024_v32 }
 0x283   : > { %v995_v39 = vadd.f32 %v1400_v29, %v994_v37  ;;  %1335 = vmatprep.subr.bf16.mxu0 %v1024_v32 }
 0x285   : > { %v996_v40 = vadd.f32 %v1400_v29, %v995_v39 }
 0x286   : > { %1336 = vmatpush3.bf16.msra.mxu0 %v1024_v32 }
 0x287   : > { %1337 = vmatprep.subr.bf16.mxu0 %v1024_v32  ;;  %v997_v41 = vadd.f32 %v1400_v29, %v996_v40 }
 0x289   : > { %v998_v42 = vrot.slane %v997_v41, 4 }
 0x28a   : > { %1338 = vmatpush3.bf16.msra.mxu0 %v1024_v32 }
 0x28b   : > { %v999_v43 = vadd.f32 %v998_v42, %v997_v41 }
 0x28d   : > { %1340 = vmatmul.mubr.bf16.vlgmr.msra.gmra.mrb[8].mxu0 %v662_v14  ;;  %v1000_v44 = vrot.slane %v999_v43, 2 }
 0x28f   : > { %v1001_v45 = vadd.f32 %v1000_v44, %v999_v43 }
 0x291   : > { %v1002_v48 = vrot.slane %v1001_v45, 1 }
 0x293   : > { %v1003_v50 = vadd.f32 %v1002_v48, %v1001_v45 }
 0x295   : > { %v1004_v52 = vadd.f32 %v1003_v50, %v982_v49 }
 0x297   : > { %1005 = vst [vmem:[#allocation5] sm:$0x1] %v1004_v52 }
 0x29e   : > { %v1093_v9 = vld [vmem:[#allocation5] sm:$0x1] }
 0x29f   : > { %1403 = vrcp.f32 %v1093_v9 }
 0x2a9   : > { %v1404_v14 = vpop.eup %1403 }
 0x2aa   : > { %v1099_v0 = vrot.slane %v1404_v14, %v1573_v51 }
 0x360   : > { %v1341_v62 = vpop.f32.mrb[8].mxu0 }
 0x361   : > { %v1079_v63 = vadd.f32 %v1341_v62, %v1016_v61  ;;  %v1062_v1 = vpop.f32.mrb[9].mxu0 }
 0x362   : > { %v1077_v2 = vadd.f32 %v1062_v1, %v1016_v61  ;;  %v1342_v3 = vpop.f32.mrb[10].mxu0 }
 0x363   : > { %v1103_v4 = vmul.f32 %v1099_v0, %v1079_v63  ;;  %v1080_v5 = vadd.f32 %v1342_v3, %v1016_v61  ;;  %v1065_v6 = vpop.f32.mrb[11].mxu0 }
 0x364   : > { %v1101_v7 = vmul.f32 %v1099_v0, %v1077_v2  ;;  %v1078_v8 = vadd.f32 %v1065_v6, %v1016_v61 }
 0x365   : > { %1107 = vst [vmem:[%s352_s18 + $0x10] sm:$0xff] %v1103_v4  ;;  %v1104_v10 = vmul.f32 %v1099_v0, %v1080_v5 }
 0x366   : > { %1105 = vst [vmem:[%s352_s18] sm:$0xff] %v1101_v7  ;;  %v1102_v12 = vmul.f32 %v1099_v0, %v1078_v8 }
 0x367   : > { %1108 = vst [vmem:[%s352_s18 + $0x18] sm:$0xff] %v1104_v10 }
 0x368   : > { %1106 = vst [vmem:[%s352_s18 + $0x8] sm:$0xff] %v1102_v12 }
 0x369 PF: > { %s17_s26 = sadd.s32 1, %s1427_s26   ;;  %s1609_s24 = smov %s1423_s25 }
 0x36a   : > { %p14_p5 = scmp.ge.s32.totalorder %s17_s26, 4   ;;  %s1610_s25 = smov %s1612_s27 }
 0x36c   :  { %16 = sbr.rel (!%p14_p5) target bundleno = 2 (0x2), region = 92 }

</bundles_post_ra>
